<compile_context>
chip_gen: v6e
topology: v6e:2x2x1
jax: 0.10.0
libtpu: 0.0.40
codegen_flags: <defaults>
</compile_context>

<pallas_src>
import functools

import jax
import jax.numpy as jnp
from jax import lax
from jax.experimental import pallas as pl
from jax.experimental.pallas import tpu as pltpu


def _round_up(x: int, m: int) -> int:
    return ((x + m - 1) // m) * m


def _linear_kernel(x_ref, w_ref, b_ref, o_ref, acc_ref):
    """One (tm, tn) output tile, accumulating over the K grid axis.

    x_ref: (tm, tk)   activations
    w_ref: (tn, tk)   PyTorch-layout weight tile (contract on last dims)
    b_ref: (1, tn)    bias tile
    o_ref: (tm, tn)   output tile
    acc_ref: (tm, tn) float32 accumulator scratch
    """
    k = pl.program_id(2)

    # Initialize accumulator with the broadcast bias on the first K step.
    @pl.when(k == 0)
    def _():
        acc_ref[...] = jnp.broadcast_to(
            b_ref[...].astype(jnp.float32), acc_ref.shape
        )

    # x @ W^T without materializing a transpose: contract dim 1 of both.
    acc_ref[...] += lax.dot_general(
        x_ref[...],
        w_ref[...],
        dimension_numbers=(((1,), (1,)), ((), ())),
        preferred_element_type=jnp.float32,
    )

    # Write back on the last K step.
    @pl.when(k == pl.num_programs(2) - 1)
    def _():
        o_ref[...] = acc_ref[...].astype(o_ref.dtype)


@functools.partial(jax.jit, static_argnames=("tm", "tn", "tk"))
def softmax_classifier_forward(x, weight, bias, *, tm=256, tn=256, tk=512):
    """Forward pass of SoftmaxClassifier (logits only — no softmax applied).

    Args:
      x:      (batch, in_dim) float32
      weight: (num_classes, in_dim) float32  (PyTorch Linear convention)
      bias:   (num_classes,) float32
    Returns:
      y:      (batch, num_classes) float32
    """
    batch, in_dim = x.shape
    num_classes = weight.shape[0]

    # Clamp tile sizes to (padded) problem dims, then pad dims to tile multiples.
    tm = min(tm, _round_up(batch, 8))          # sublane-aligned M tile
    tn = min(tn, _round_up(num_classes, 128))  # lane-dense N tile (mult of 128)
    tk = min(tk, _round_up(in_dim, 128))       # lane-dense K tile (mult of 128)

    m_pad = _round_up(batch, tm)
    n_pad = _round_up(num_classes, tn)
    k_pad = _round_up(in_dim, tk)

    # Zero-pad: extra K columns contribute 0 to the dot; extra M rows / N cols
    # are sliced away below.
    x_p = jnp.pad(x, ((0, m_pad - batch), (0, k_pad - in_dim)))
    w_p = jnp.pad(weight, ((0, n_pad - num_classes), (0, k_pad - in_dim)))
    b_p = jnp.pad(bias, (0, n_pad - num_classes)).reshape(1, n_pad)

    grid = (m_pad // tm, n_pad // tn, k_pad // tk)

    cost = pl.CostEstimate(
        flops=2 * m_pad * k_pad * n_pad,
        transcendentals=0,
        bytes_accessed=4 * (m_pad * k_pad + k_pad * n_pad + m_pad * n_pad),
    )

    out_p = pl.pallas_call(
        _linear_kernel,
        out_shape=jax.ShapeDtypeStruct((m_pad, n_pad), x.dtype),
        grid_spec=pltpu.PrefetchScalarGridSpec(
            num_scalar_prefetch=0,
            grid=grid,
            in_specs=[
                pl.BlockSpec((tm, tk), lambda i, j, k: (i, k)),  # x
                pl.BlockSpec((tn, tk), lambda i, j, k: (j, k)),  # weight (untransposed)
                pl.BlockSpec((1, tn), lambda i, j, k: (0, j)),   # bias
            ],
            out_specs=pl.BlockSpec((tm, tn), lambda i, j, k: (i, j)),
            scratch_shapes=[pltpu.VMEM((tm, tn), jnp.float32)],
        ),
        compiler_params=pltpu.CompilerParams(
            dimension_semantics=("parallel", "parallel", "arbitrary"),
        ),
        cost_estimate=cost,
    )(x_p, w_p, b_p)

    return out_p[:batch, :num_classes]


if __name__ == "__main__":
    key = jax.random.PRNGKey(0)

    def make_inputs(key, batch, in_dim, num_classes):
        kx, kw, kb = jax.random.split(key, 3)
        x = jax.random.normal(kx, (batch, in_dim), dtype=jnp.float32)
        # PyTorch-Linear-style init: U(-1/sqrt(in_dim), 1/sqrt(in_dim))
        bound = 1.0 / (in_dim ** 0.5)
        weight = jax.random.uniform(
            kw, (num_classes, in_dim), minval=-bound, maxval=bound,
            dtype=jnp.float32,
        )
        bias = jax.random.uniform(
            kb, (num_classes,), minval=-bound, maxval=bound, dtype=jnp.float32
        )
        return x, weight, bias

    # 1) Small shape consistent with the module: (batch, in_dim) -> (batch, classes).
    k1, k2 = jax.random.split(key)
    x, weight, bias = make_inputs(k1, batch=2, in_dim=32, num_classes=10)
    y = jax.block_until_ready(softmax_classifier_forward(x, weight, bias))
    y_ref = x @ weight.T + bias
    assert y.shape == (2, 10)
    assert jnp.allclose(y, y_ref, atol=1e-5, rtol=1e-5)

    # 2) Multi-tile shape to exercise the 3-D grid, K accumulation and padding path.
    x2, w2, b2 = make_inputs(k2, batch=384, in_dim=640, num_classes=384)
    y2 = jax.block_until_ready(softmax_classifier_forward(x2, w2, b2))
    y2_ref = x2 @ w2.T + b2
    assert y2.shape == (384, 384)
    assert jnp.allclose(y2, y2_ref, atol=1e-4, rtol=1e-4)

    print("KERNEL_OK")
</pallas_src>

<mosaic_0001>
module attributes {stable_mosaic.version = 11 : i64} {
  func.func @_linear_kernel(%arg0: i32, %arg1: i32, %arg2: i32, %arg3: memref<8x128xf32, #tpu.memory_space<vmem>>, %arg4: memref<128x128xf32, #tpu.memory_space<vmem>>, %arg5: memref<1x128xf32, #tpu.memory_space<vmem>>, %arg6: memref<8x128xf32, #tpu.memory_space<vmem>>, %arg7: memref<8x128xf32, #tpu.memory_space<vmem>>) attributes {dimension_semantics = [#tpu.dimension_semantics<parallel>, #tpu.dimension_semantics<parallel>, #tpu.dimension_semantics<arbitrary>], iteration_bounds = array<i64: 1, 1, 1>, scalar_prefetch = 0 : i64, scratch_operands = 1 : i64, tpu.core_type = #tpu.core_type<tc>, window_params = [{transform_indices = @transform_0, window_bounds = array<i64: 8, 128>}, {transform_indices = @transform_1, window_bounds = array<i64: 128, 128>}, {transform_indices = @transform_2, window_bounds = array<i64: 1, 128>}, {transform_indices = @transform_3, window_bounds = array<i64: 8, 128>}]} {
    %c0_i32 = arith.constant 0 : i32
    %0 = arith.cmpi eq, %arg2, %c0_i32 : i32
    %1 = arith.extui %0 : i1 to i32
    %c0_i32_0 = arith.constant 0 : i32
    %2 = arith.cmpi ne, %1, %c0_i32_0 : i32
    scf.if %2 {
      %c0_10 = arith.constant 0 : index
      %c0_11 = arith.constant 0 : index
      %12 = vector.load %arg5[%c0_10, %c0_11] : memref<1x128xf32, #tpu.memory_space<vmem>>, vector<1x128xf32>
      %13 = vector.shape_cast %12 : vector<1x128xf32> to vector<1x128xf32>
      %14 = vector.broadcast %13 : vector<1x128xf32> to vector<8x128xf32>
      %c0_12 = arith.constant 0 : index
      %c0_13 = arith.constant 0 : index
      %15 = vector.load %arg7[%c0_12, %c0_13] : memref<8x128xf32, #tpu.memory_space<vmem>>, vector<8x128xf32>
      tpu.vector_store %arg7[%c0_12, %c0_13], %14 {strides = array<i32>} : memref<8x128xf32, #tpu.memory_space<vmem>>, vector<8x128xf32>,
    } else {
    }
    %c0 = arith.constant 0 : index
    %c0_1 = arith.constant 0 : index
    %3 = vector.load %arg7[%c0, %c0_1] : memref<8x128xf32, #tpu.memory_space<vmem>>, vector<8x128xf32>
    %c0_2 = arith.constant 0 : index
    %c0_3 = arith.constant 0 : index
    %4 = vector.load %arg3[%c0_2, %c0_3] : memref<8x128xf32, #tpu.memory_space<vmem>>, vector<8x128xf32>
    %c0_4 = arith.constant 0 : index
    %c0_5 = arith.constant 0 : index
    %5 = vector.load %arg4[%c0_4, %c0_5] : memref<128x128xf32, #tpu.memory_space<vmem>>, vector<128x128xf32>
    %cst = arith.constant dense<0.000000e+00> : vector<8x128xf32>
    %6 = tpu.matmul %4, %5, %cst {dimension_numbers = #tpu.dot_dimension_numbers<[1], [1], [0], [0], [0, 0, 1, 0], [], []>} : vector<8x128xf32>, vector<128x128xf32>, vector<8x128xf32> -> vector<8x128xf32>
    %7 = arith.addf %3, %6 : vector<8x128xf32>
    %c0_6 = arith.constant 0 : index
    %c0_7 = arith.constant 0 : index
    %8 = vector.load %arg7[%c0_6, %c0_7] : memref<8x128xf32, #tpu.memory_space<vmem>>, vector<8x128xf32>
    tpu.vector_store %arg7[%c0_6, %c0_7], %7 {strides = array<i32>} : memref<8x128xf32, #tpu.memory_space<vmem>>, vector<8x128xf32>,
    %c0_i32_8 = arith.constant 0 : i32
    %9 = arith.cmpi eq, %arg2, %c0_i32_8 : i32
    %10 = arith.extui %9 : i1 to i32
    %c0_i32_9 = arith.constant 0 : i32
    %11 = arith.cmpi ne, %10, %c0_i32_9 : i32
    scf.if %11 {
      %c0_10 = arith.constant 0 : index
      %c0_11 = arith.constant 0 : index
      %12 = vector.load %arg7[%c0_10, %c0_11] : memref<8x128xf32, #tpu.memory_space<vmem>>, vector<8x128xf32>
      %c0_12 = arith.constant 0 : index
      %c0_13 = arith.constant 0 : index
      %13 = vector.load %arg6[%c0_12, %c0_13] : memref<8x128xf32, #tpu.memory_space<vmem>>, vector<8x128xf32>
      tpu.vector_store %arg6[%c0_12, %c0_13], %12 {strides = array<i32>} : memref<8x128xf32, #tpu.memory_space<vmem>>, vector<8x128xf32>,
    } else {
    }
    return
  }
  func.func @transform_0(%arg0: i32, %arg1: i32, %arg2: i32) -> (i32, i32) {
    %c0_i32 = arith.constant 0 : i32
    return %arg0, %arg2 : i32, i32
  }
  func.func @transform_1(%arg0: i32, %arg1: i32, %arg2: i32) -> (i32, i32) {
    %c0_i32 = arith.constant 0 : i32
    return %arg1, %arg2 : i32, i32
  }
  func.func @transform_2(%arg0: i32, %arg1: i32, %arg2: i32) -> (i32, i32) {
    %c0_i32 = arith.constant 0 : i32
    %c0_i32_0 = arith.constant 0 : i32
    return %c0_i32, %arg1 : i32, i32
  }
  func.func @transform_3(%arg0: i32, %arg1: i32, %arg2: i32) -> (i32, i32) {
    %c0_i32 = arith.constant 0 : i32
    return %arg0, %arg1 : i32, i32
  }
}

</mosaic_0001>

<bundles_post_ra>
// kernel: softmax_classifier_forward.1
= control target key start
LH: loop header
LB: loop body
LE: loop exit
PB: predicated region body
PF: predicated region fallthrough
CT: control target
= control target key end

     0   :  { %v180_v0 = vmov 0.0   ;;  %vm181_vm0 = vmmov 0   ;;  %s259_s1 = inlined_call_operand.vmem [shape: f32[128,128], index: 1, kind: input, shape index: {}]   ;;  %s260_s0 = inlined_call_operand.vmem [shape: f32[8,128], index: 0, kind: input, shape index: {}]   ;;  %s261_s2 = inlined_call_operand.vmem [shape: f32[1,128], index: 2, kind: input, shape index: {}]   ;;  %s262_s3 = inlined_call_operand.vmem [shape: f32[8,128], index: 3, kind: output, shape index: {}]  }
   0x1   :  { %143 = vmatprep.subr.mxu0 %v180_v0  ;;  %v43_v1 = vld [vmem:[%s259_s1 + $0x78] sm:$0xff]  ;;  %175 = vmatprep.mubr.msk.f32.mxu0 %vm181_vm0, %v180_v0  ;;  %v42_v2 = vld [vmem:[%s259_s1 + $0x70] sm:$0xff]  ;;  %v41_v3 = vld [vmem:[%s259_s1 + $0x68] sm:$0xff] }
   0x2   :  { %144 = vmatpush3.xpose.msra.mxu0 %v43_v1  ;;  %v40_v4 = vld [vmem:[%s259_s1 + $0x60] sm:$0xff]  ;;  %v39_v5 = vld [vmem:[%s259_s1 + $0x58] sm:$0xff]  ;;  %v38_v6 = vld [vmem:[%s259_s1 + $0x50] sm:$0xff] }
   0x3   :  { %145 = vmatprep.subr.mxu0 %v180_v0  ;;  %v37_v7 = vld [vmem:[%s259_s1 + $0x48] sm:$0xff]  ;;  %v36_v8 = vld [vmem:[%s259_s1 + $0x40] sm:$0xff]  ;;  %v35_v9 = vld [vmem:[%s259_s1 + $0x38] sm:$0xff] }
   0x4   :  { %v34_v10 = vld [vmem:[%s259_s1 + $0x30] sm:$0xff]  ;;  %v33_v11 = vld [vmem:[%s259_s1 + $0x28] sm:$0xff]  ;;  %v32_v12 = vld [vmem:[%s259_s1 + $0x20] sm:$0xff] }
   0x5   :  { %v31_v13 = vld [vmem:[%s259_s1 + $0x18] sm:$0xff]  ;;  %v30_v14 = vld [vmem:[%s259_s1 + $0x10] sm:$0xff]  ;;  %v29_v15 = vld [vmem:[%s259_s1 + $0x8] sm:$0xff] }
   0x6   :  { %146 = vmatpush3.xpose.msra.mxu0 %v42_v2  ;;  %v28_v16 = vld [vmem:[%s259_s1] sm:$0xff] }
   0x7   :  { %147 = vmatprep.subr.mxu0 %v180_v0  ;;  %v27_v17 = vld [vmem:[%s260_s0] sm:$0xff] }
   0x8   :  { %v125_v18 = vld [vmem:[%s261_s2] ss:$0 sm:$0xff] }
   0xa   :  { %148 = vmatpush3.xpose.msra.mxu0 %v41_v3 }
   0xb   :  { %149 = vmatprep.subr.mxu0 %v180_v0 }
   0xe   :  { %150 = vmatpush3.xpose.msra.mxu0 %v40_v4 }
   0xf   :  { %151 = vmatprep.subr.mxu0 %v180_v0 }
  0x12   :  { %152 = vmatpush3.xpose.msra.mxu0 %v39_v5 }
  0x13   :  { %153 = vmatprep.subr.mxu0 %v180_v0 }
  0x16   :  { %154 = vmatpush3.xpose.msra.mxu0 %v38_v6 }
  0x17   :  { %155 = vmatprep.subr.mxu0 %v180_v0 }
  0x1a   :  { %156 = vmatpush3.xpose.msra.mxu0 %v37_v7 }
  0x1b   :  { %157 = vmatprep.subr.mxu0 %v180_v0 }
  0x1e   :  { %158 = vmatpush3.xpose.msra.mxu0 %v36_v8 }
  0x1f   :  { %159 = vmatprep.subr.mxu0 %v180_v0 }
  0x22   :  { %160 = vmatpush3.xpose.msra.mxu0 %v35_v9 }
  0x23   :  { %161 = vmatprep.subr.mxu0 %v180_v0 }
  0x26   :  { %162 = vmatpush3.xpose.msra.mxu0 %v34_v10 }
  0x27   :  { %163 = vmatprep.subr.mxu0 %v180_v0 }
  0x2a   :  { %164 = vmatpush3.xpose.msra.mxu0 %v33_v11 }
  0x2b   :  { %165 = vmatprep.subr.mxu0 %v180_v0 }
  0x2e   :  { %166 = vmatpush3.xpose.msra.mxu0 %v32_v12 }
  0x2f   :  { %167 = vmatprep.subr.mxu0 %v180_v0 }
  0x32   :  { %168 = vmatpush3.xpose.msra.mxu0 %v31_v13 }
  0x33   :  { %169 = vmatprep.subr.mxu0 %v180_v0 }
  0x36   :  { %170 = vmatpush3.xpose.msra.mxu0 %v30_v14 }
  0x37   :  { %171 = vmatprep.subr.mxu0 %v180_v0 }
  0x3a   :  { %172 = vmatpush3.xpose.msra.mxu0 %v29_v15 }
  0x3b   :  { %173 = vmatprep.subr.mxu0 %v180_v0 }
  0x3e   :  { %174 = vmatpush3.xpose.msra.mxu0 %v28_v16 }
  0x41   :  { %176 = vmatmul.mubr.f32.vlgmr.msra.gmra.mxu0 %v27_v17 }
 0x101   :  { %v110_v19 = vpop.f32.mrf.mxu0 }
 0x102   :  { %v114_v20 = vadd.f32 %v125_v18, %v110_v19 }
 0x103   :  { %v177_v21 = vpop.f32.mrf.mxu0 }
 0x104   :  { %120 = vst [vmem:[%s262_s3] sm:$0xff] %v114_v20 }

</bundles_post_ra>
